<compile_context>
chip_gen: v7x
topology: tpu7x:2x2x1
jax: 0.10.0
libtpu: 0.0.40
codegen_flags: <defaults>
</compile_context>

<pallas_src>
import functools

import jax
import jax.numpy as jnp
from jax.experimental import pallas as pl
from jax.experimental.pallas import tpu as pltpu


# ----------------------------- kernels --------------------------------------


def _instance_norm_affine_kernel(x_ref, wb_ref, o_ref, *, eps, inv_hw):
    # x_ref: (tile_rows, HW); wb_ref: (tile_rows, 2) f32 = [weight, bias] per row.
    x = x_ref[...].astype(jnp.float32)
    mean = jnp.sum(x, axis=-1, keepdims=True) * inv_hw
    xc = x - mean
    var = jnp.sum(xc * xc, axis=-1, keepdims=True) * inv_hw      # biased variance
    inv_std = jax.lax.rsqrt(var + eps)
    wb = wb_ref[...]
    scale = inv_std * wb[:, 0:1]                                  # fold affine into scale
    o_ref[...] = (xc * scale + wb[:, 1:2]).astype(o_ref.dtype)


def _instance_norm_plain_kernel(x_ref, o_ref, *, eps, inv_hw):
    x = x_ref[...].astype(jnp.float32)
    mean = jnp.sum(x, axis=-1, keepdims=True) * inv_hw
    xc = x - mean
    var = jnp.sum(xc * xc, axis=-1, keepdims=True) * inv_hw
    o_ref[...] = (xc * jax.lax.rsqrt(var + eps)).astype(o_ref.dtype)


def _row_stats_kernel(x_ref, sum_ref, sumsq_ref, *, hw, tile_hw):
    # Accumulate per-row sum / sum-of-squares across lane tiles of HW.
    j = pl.program_id(1)
    x = x_ref[...].astype(jnp.float32)
    lane = jax.lax.broadcasted_iota(jnp.int32, x.shape, 1)
    x = jnp.where(j * tile_hw + lane < hw, x, 0.0)                # mask padded lanes

    @pl.when(j == 0)
    def _():
        sum_ref[...] = jnp.zeros_like(sum_ref)
        sumsq_ref[...] = jnp.zeros_like(sumsq_ref)

    sum_ref[...] += jnp.sum(x, axis=-1, keepdims=True)
    sumsq_ref[...] += jnp.sum(x * x, axis=-1, keepdims=True)


def _apply_scale_shift_kernel(x_ref, ss_ref, o_ref):
    # ss_ref: (tile_rows, 2) f32 = [scale, shift] per row.
    x = x_ref[...].astype(jnp.float32)
    ss = ss_ref[...]
    o_ref[...] = (x * ss[:, 0:1] + ss[:, 1:2]).astype(o_ref.dtype)


# ----------------------------- tiling policy ---------------------------------


def _sublane_granule(dtype):
    # 8 rows for 32-bit, 16 for bf16, 32 for int8/fp8 (sublane packing).
    return max(8, 32 // jnp.dtype(dtype).itemsize)


def _round_up(x, m):
    return -(-x // m) * m


def _vmem_budget_bytes():
    # Total budget for the double-buffered tiles; stays inside the default
    # scoped-VMEM limits (v5e 16 MiB, v6e 32 MiB, v7x 32 of 64 MiB physical)
    # so no vmem_limit override is needed.
    try:
        kind = jax.devices()[0].device_kind.lower()
    except Exception:
        kind = ""
    if "v5" in kind:
        return 12 * 1024 * 1024
    if "v6" in kind:
        return 24 * 1024 * 1024
    if "v7" in kind:
        return 26 * 1024 * 1024
    return 14 * 1024 * 1024        # unknown generation: be conservative


def _pick_tile_rows(total_rows, bytes_per_row, granule, budget, min_steps=4):
    """Rows per grid step for the fast path.

    multiple of `granule` (or == total_rows); footprint <= budget; capped so the
    grid has >= min_steps iterations when total_rows allows (pipelining overlap
    + both v7x TensorCores busy)."""
    rows_fit = max(granule, (budget // bytes_per_row) // granule * granule)
    rows_cap = _round_up(_round_up(total_rows, min_steps) // min_steps, granule)
    tile = max(granule, min(rows_fit, rows_cap))
    if tile >= total_rows:
        return total_rows
    return tile


# ----------------------------- wrappers --------------------------------------


def _instance_norm_split(xf, w_rows, b_rows, *, eps, affine, granule, budget,
                         itemsize, tile_hw=None):
    """Large-HW fallback: 2-D grid over (row tiles, lane tiles of HW).

    Note: uses var = E[x^2] - mean^2 with f32 accumulation; slight cancellation
    is possible for inputs with |mean| >> std (acceptable for this module)."""
    R, HW = xf.shape
    tile_rows = R if R <= granule else granule
    if tile_hw is None:
        fit = max(128, budget // (4 * tile_rows * itemsize))
        tile_hw = (fit // 128) * 128
        if tile_hw >= HW:
            tile_hw = HW
    grid = (pl.cdiv(R, tile_rows), pl.cdiv(HW, tile_hw))

    x_spec = pl.BlockSpec((tile_rows, tile_hw), lambda i, j: (i, j))
    col_spec = pl.BlockSpec((tile_rows, 1), lambda i, j: (i, 0))

    stats_kernel = functools.partial(_row_stats_kernel, hw=HW, tile_hw=tile_hw)
    sums, sumsqs = pl.pallas_call(
        stats_kernel,
        out_shape=(jax.ShapeDtypeStruct((R, 1), jnp.float32),
                   jax.ShapeDtypeStruct((R, 1), jnp.float32)),
        grid=grid,
        in_specs=[x_spec],
        out_specs=(col_spec, col_spec),
        compiler_params=pltpu.CompilerParams(
            dimension_semantics=("parallel", "arbitrary")),
    )(xf)

    inv_hw = 1.0 / HW
    mean = sums * inv_hw
    var = jnp.maximum(sumsqs * inv_hw - mean * mean, 0.0)
    inv_std = jax.lax.rsqrt(var + eps)
    if affine:
        scale = inv_std * w_rows
        shift = b_rows - mean * scale
    else:
        scale = inv_std
        shift = -mean * inv_std
    ss = jnp.concatenate([scale, shift], axis=-1)                 # (R, 2) f32

    out = pl.pallas_call(
        _apply_scale_shift_kernel,
        out_shape=jax.ShapeDtypeStruct((R, HW), xf.dtype),
        grid=grid,
        in_specs=[x_spec, pl.BlockSpec((tile_rows, 2), lambda i, j: (i, 0))],
        out_specs=x_spec,
        compiler_params=pltpu.CompilerParams(
            dimension_semantics=("parallel", "parallel")),
    )(xf, ss)
    return out


def instance_norm(x, weight=None, bias=None, *, eps=1e-5, affine=True,
                  force_split=False, _split_tile_hw=None):
    """x: (N, C, H, W); weight/bias: (C,). Matches PyTorch InstanceNorm.forward."""
    N, C, H, W = x.shape
    HW = H * W
    R = N * C
    itemsize = jnp.dtype(x.dtype).itemsize
    granule = _sublane_granule(x.dtype)
    budget = _vmem_budget_bytes()
    padded_hw = _round_up(HW, 128)

    xf = x.reshape(R, HW)                      # free: row-major contiguous

    if affine:
        if weight is None:
            weight = jnp.ones((C,), jnp.float32)
        if bias is None:
            bias = jnp.zeros((C,), jnp.float32)
        w_rows = jnp.tile(weight.astype(jnp.float32), N).reshape(R, 1)
        b_rows = jnp.tile(bias.astype(jnp.float32), N).reshape(R, 1)
    else:
        w_rows = b_rows = None

    # Per-row VMEM footprint: double-buffered x-in + x-out tiles, plus the
    # packed (rows, 2) weight/bias block whose 2-wide last dim pads to a full
    # 128-lane f32 vreg row (double-buffered).
    bytes_per_row = 4 * padded_hw * itemsize + (2 * 128 * 4 if affine else 0)

    if force_split or (granule * bytes_per_row > budget):
        out = _instance_norm_split(xf, w_rows, b_rows, eps=float(eps),
                                   affine=affine, granule=granule,
                                   budget=budget, itemsize=itemsize,
                                   tile_hw=_split_tile_hw)
        return out.reshape(N, C, H, W)

    tile_rows = _pick_tile_rows(R, bytes_per_row, granule, budget)
    grid = (pl.cdiv(R, tile_rows),)
    x_spec = pl.BlockSpec((tile_rows, HW), lambda i: (i, 0))
    cparams = pltpu.CompilerParams(dimension_semantics=("parallel",))

    if affine:
        wb = jnp.concatenate([w_rows, b_rows], axis=-1)           # (R, 2) f32
        kernel = functools.partial(_instance_norm_affine_kernel,
                                   eps=float(eps), inv_hw=float(1.0 / HW))
        out = pl.pallas_call(
            kernel,
            out_shape=jax.ShapeDtypeStruct((R, HW), x.dtype),
            grid=grid,
            in_specs=[x_spec, pl.BlockSpec((tile_rows, 2), lambda i: (i, 0))],
            out_specs=x_spec,
            compiler_params=cparams,
        )(xf, wb)
    else:
        kernel = functools.partial(_instance_norm_plain_kernel,
                                   eps=float(eps), inv_hw=float(1.0 / HW))
        out = pl.pallas_call(
            kernel,
            out_shape=jax.ShapeDtypeStruct((R, HW), x.dtype),
            grid=grid,
            in_specs=[x_spec],
            out_specs=x_spec,
            compiler_params=cparams,
        )(xf)

    return out.reshape(N, C, H, W)


def instance_norm_ref(x, weight=None, bias=None, *, eps=1e-5, affine=True):
    """Pure-JAX reference mirroring the PyTorch forward."""
    N, C, H, W = x.shape
    xf = x.reshape(N, C, H * W).astype(jnp.float32)
    mean = xf.mean(axis=2, keepdims=True)
    xc = xf - mean
    inv_std = jax.lax.rsqrt((xc ** 2).mean(axis=2, keepdims=True) + eps)
    y = (xc * inv_std).reshape(N, C, H, W)
    if affine:
        y = (y * weight.astype(jnp.float32)[None, :, None, None]
             + bias.astype(jnp.float32)[None, :, None, None])
    return y.astype(x.dtype)


if __name__ == "__main__":
    key = jax.random.PRNGKey(0)
    k_x, k_w, k_x2 = jax.random.split(key, 3)

    eps = 1e-5
    N, C, H, W = 2, 4, 16, 16            # num_features = C = 4
    x = jax.random.normal(k_x, (N, C, H, W), dtype=jnp.float32)
    # Deterministic init matching reset_parameters(): weight ~ N(0, 0.02), bias = 0
    weight = 0.02 * jax.random.normal(k_w, (C,), dtype=jnp.float32)
    bias = jnp.zeros((C,), dtype=jnp.float32)

    # 1) affine fast path
    out = jax.block_until_ready(instance_norm(x, weight, bias, eps=eps, affine=True))
    ref = instance_norm_ref(x, weight, bias, eps=eps, affine=True)
    assert out.shape == x.shape and out.dtype == x.dtype
    assert jnp.allclose(out, ref, atol=1e-5, rtol=1e-5), "affine fast path mismatch"

    # 2) non-affine fast path (no weight/bias inputs at all)
    out_na = jax.block_until_ready(instance_norm(x, eps=eps, affine=False))
    ref_na = instance_norm_ref(x, eps=eps, affine=False)
    assert jnp.allclose(out_na, ref_na, atol=1e-5, rtol=1e-5), "non-affine mismatch"

    # 3) multi-step grid (>=2 steps -> pipelined, megacore-shardable)
    x2 = jax.random.normal(k_x2, (4, C, H, W), dtype=jnp.float32)
    out2 = jax.block_until_ready(instance_norm(x2, weight, bias, eps=eps, affine=True))
    ref2 = instance_norm_ref(x2, weight, bias, eps=eps, affine=True)
    assert jnp.allclose(out2, ref2, atol=1e-5, rtol=1e-5), "multi-tile mismatch"

    # 4) large-HW fallback path, forced at a small shape to exercise it
    out_sp = jax.block_until_ready(
        instance_norm(x, weight, bias, eps=eps, affine=True,
                      force_split=True, _split_tile_hw=128))
    assert jnp.allclose(out_sp, ref, atol=1e-4, rtol=1e-4), "split-HW path mismatch"

    print("KERNEL_OK")
</pallas_src>

<mosaic_0001>
module attributes {stable_mosaic.version = 11 : i64} {
  func.func @_instance_norm_affine_kernel(%arg0: i32, %arg1: memref<8x256xf32, #tpu.memory_space<vmem>>, %arg2: memref<8x2xf32, #tpu.memory_space<vmem>>, %arg3: memref<8x256xf32, #tpu.memory_space<vmem>>) attributes {dimension_semantics = [#tpu.dimension_semantics<parallel>], iteration_bounds = array<i64: 1>, scalar_prefetch = 0 : i64, scratch_operands = 0 : i64, tpu.core_type = #tpu.core_type<tc>, window_params = [{transform_indices = @transform_0, window_bounds = array<i64: 8, 256>}, {transform_indices = @transform_1, window_bounds = array<i64: 8, 2>}, {transform_indices = @transform_2, window_bounds = array<i64: 8, 256>}]} {
    %c0 = arith.constant 0 : index
    %c0_0 = arith.constant 0 : index
    %0 = vector.load %arg1[%c0, %c0_0] : memref<8x256xf32, #tpu.memory_space<vmem>>, vector<8x256xf32>
    %cst = arith.constant dense<0.000000e+00> : vector<8xf32>
    %1 = vector.multi_reduction <add>, %0, %cst [1] : vector<8x256xf32> to vector<8xf32>
    %2 = vector.shape_cast %1 : vector<8xf32> to vector<8x1xf32>
    %cst_1 = arith.constant 3.906250e-03 : f32
    %3 = vector.broadcast %cst_1 : f32 to vector<8x1xf32>
    %4 = arith.mulf %2, %3 : vector<8x1xf32>
    %5 = vector.broadcast %4 : vector<8x1xf32> to vector<8x256xf32>
    %6 = arith.subf %0, %5 : vector<8x256xf32>
    %7 = arith.mulf %6, %6 : vector<8x256xf32>
    %cst_2 = arith.constant dense<0.000000e+00> : vector<8xf32>
    %8 = vector.multi_reduction <add>, %7, %cst_2 [1] : vector<8x256xf32> to vector<8xf32>
    %9 = vector.shape_cast %8 : vector<8xf32> to vector<8x1xf32>
    %cst_3 = arith.constant 3.906250e-03 : f32
    %10 = vector.broadcast %cst_3 : f32 to vector<8x1xf32>
    %11 = arith.mulf %9, %10 : vector<8x1xf32>
    %cst_4 = arith.constant 9.99999974E-6 : f32
    %12 = vector.broadcast %cst_4 : f32 to vector<8x1xf32>
    %13 = arith.addf %11, %12 : vector<8x1xf32>
    %14 = math.rsqrt %13 : vector<8x1xf32>
    %c0_5 = arith.constant 0 : index
    %c0_6 = arith.constant 0 : index
    %15 = vector.load %arg2[%c0_5, %c0_6] : memref<8x2xf32, #tpu.memory_space<vmem>>, vector<8x2xf32>
    %16 = vector.extract_strided_slice %15 {offsets = [0, 0], sizes = [8, 1], strides = [1, 1]} : vector<8x2xf32> to vector<8x1xf32>
    %17 = arith.mulf %14, %16 : vector<8x1xf32>
    %18 = vector.broadcast %17 : vector<8x1xf32> to vector<8x256xf32>
    %19 = arith.mulf %6, %18 : vector<8x256xf32>
    %20 = vector.extract_strided_slice %15 {offsets = [0, 1], sizes = [8, 1], strides = [1, 1]} : vector<8x2xf32> to vector<8x1xf32>
    %21 = vector.broadcast %20 : vector<8x1xf32> to vector<8x256xf32>
    %22 = arith.addf %19, %21 : vector<8x256xf32>
    %c0_7 = arith.constant 0 : index
    %c0_8 = arith.constant 0 : index
    %23 = vector.load %arg3[%c0_7, %c0_8] : memref<8x256xf32, #tpu.memory_space<vmem>>, vector<8x256xf32>
    tpu.vector_store %arg3[%c0_7, %c0_8], %22 {strides = array<i32>} : memref<8x256xf32, #tpu.memory_space<vmem>>, vector<8x256xf32>,
    return
  }
  func.func @transform_0(%arg0: i32) -> (i32, i32) {
    %c0_i32 = arith.constant 0 : i32
    %c0_i32_0 = arith.constant 0 : i32
    return %arg0, %c0_i32 : i32, i32
  }
  func.func @transform_1(%arg0: i32) -> (i32, i32) {
    %c0_i32 = arith.constant 0 : i32
    %c0_i32_0 = arith.constant 0 : i32
    return %arg0, %c0_i32 : i32, i32
  }
  func.func @transform_2(%arg0: i32) -> (i32, i32) {
    %c0_i32 = arith.constant 0 : i32
    %c0_i32_0 = arith.constant 0 : i32
    return %arg0, %c0_i32 : i32, i32
  }
}

</mosaic_0001>

<bundles_post_ra>
// kernel: tpu_custom_call.1
= control target key start
LH: loop header
LB: loop body
LE: loop exit
PB: predicated region body
PF: predicated region fallthrough
CT: control target
= control target key end

     0   :  { %7 = vsyncpa [#allocation3], 0  ;;  %s176_s0 = inlined_call_operand.hbm [shape: f32[8,256], index: 0, kind: input, shape index: {}]   ;;  %s177_s1 = inlined_call_operand.vmem [shape: f32[8,2], index: 1, kind: input, shape index: {}]   ;;  %s178_s2 = inlined_call_operand.hbm [shape: f32[8,256], index: 2, kind: output, shape index: {}]  }
   0x1   :  { %8 = vsyncpa [#allocation4], 0  ;;  %s130_s9 = smov [#allocation2]   ;;  %s82_s13 = scalar_lea.hbm %s176_s0, 256 }
   0x2   :  { %s15_s10 = sshll.u32 %s130_s9, 4  ;;  %p83_p0 = scmp.ne.s32.totalorder %s176_s0, %s82_s13  ;;  %s16_s10 = int_to_ptr.vmem [resolvable:$true] %s15_s10 }
   0x3   :  { %p86_p1 = scmp.lt.u32.totalorder %s82_s13, %s176_s0 }
   0x5   :  { %p88_p2 = pnand %p86_p1, %p83_p0 }
   0x7   :  { %91 = shalt.err (!%p88_p2)
}
   0x8   :  { %s92_s18 = scalar_lea.vmem %s16_s10, 256  ;;  %p97_p4 = scmp.lt.s32.totalorder %s16_s10, %s16_s10 }
   0x9   :  { %p93_p3 = scmp.ne.s32.totalorder %s16_s10, %s92_s18  ;;  %p98_p5 = scmp.lt.s32.totalorder %s92_s18, %s92_s18 }
   0xb   :  { %p99_p6 = por %p98_p5, %p97_p4 }
   0xd   :  { %p100_p7 = pnand %p99_p6, %p93_p3 }
   0xf   :  { %103 = shalt.err (!%p100_p7)
}
  0x10   :  { %18 = dma.hbm_to_vmem [thread:$0]  %s176_s0, 256, %s16_s10, [#allocation3]  }
  0x11   :  { %126 = dma.done.wait [#allocation3], 256  }
  0x12   :  { %127 = vsyncadd [#allocation3], 4294967040  ;;  %v24_v0 = vld [vmem:[#allocation2] sm:$0xff]  ;;  %v25_v1 = vld [vmem:[#allocation2 + $0x8] sm:$0xff]  ;;  %v131_v10 = vmov 0   ;;  %v132_v11 = vmov 1  }
  0x13   :  { %v26_v2 = vadd.f32 %v25_v1, %v24_v0  ;;  %77 = vset.pattern.permute.xlu1 %v131_v10  ;;  %79 = vset.pattern.permute.xlu0 %v132_v11  ;;  %v40_v15 = vld [vmem:[%s177_s1] sm:$0xff]  ;;  %s133_s22 = smov [#allocation5]  }
  0x14   :  { %s64_s23 = sshll.u32 %s133_s22, 4  ;;  %s65_s23 = int_to_ptr.vmem [resolvable:$true] %s64_s23 }
  0x15   :  { %27 = vadd.xlane.f32.xlu0 %v26_v2  ;;  %s104_s24 = scalar_lea.vmem %s65_s23, 256  ;;  %p109_p9 = scmp.lt.s32.totalorder %s65_s23, %s65_s23 }
  0x16   :  { %p105_p8 = scmp.ne.s32.totalorder %s65_s23, %s104_s24  ;;  %p110_p10 = scmp.lt.s32.totalorder %s104_s24, %s104_s24 }
  0x18   :  { %p111_p11 = por %p110_p10, %p109_p9 }
  0x1a   :  { %p112_p12 = pnand %p111_p11, %p105_p8 }
  0xa2   :  { %v28_v3 = vpop.xlane.xlu0 %27 }
  0xa3   :  { %v29_v4 = vmul.f32 0.00390625, %v28_v3 }
  0xa5   :  { %v30_v5 = vsub.f32 %v24_v0, %v29_v4  ;;  %v31_v6 = vsub.f32 %v25_v1, %v29_v4 }
  0xa7   :  { %v32_v7 = vmul.f32 %v30_v5, %v30_v5  ;;  %v33_v8 = vmul.f32 %v31_v6, %v31_v6 }
  0xa9   :  { %v34_v9 = vadd.f32 %v33_v8, %v32_v7 }
  0xab   :  { %35 = vadd.xlane.f32.xlu0 %v34_v9 }
 0x138   :  { %v36_v12 = vpop.xlane.xlu0 %35 }
 0x139   :  { %v37_v13 = vmul.f32 0.00390625, %v36_v12 }
 0x13b   :  { %v38_v14 = vadd.f32 1e-05, %v37_v13 }
 0x13d   :  { %80 = vrsqrt.f32 %v38_v14 }
 0x147   :  { %v81_v16 = vpop.eup %80 }
 0x148   :  { %v41_v17 = vmul.f32 %v81_v16, %v40_v15 }
 0x14a   :  { %44 = vperm.xlu1 %77, %v41_v17  }
 0x14e   :  { %78 = vset.pattern.permute.xlu1 %v132_v11 }
 0x14f   :  { %51 = vperm.xlu1 %78, %v40_v15  }
 0x1c9   :  { %v45_v18 = vpop.permute.xlu1 %44 }
 0x1ca   :  { %v47_v19 = vmul.f32 %v45_v18, %v30_v5  ;;  %v48_v20 = vmul.f32 %v45_v18, %v31_v6 }
 0x1ce   :  { %v52_v21 = vpop.permute.xlu1 %51 }
 0x1cf   :  { %v54_v22 = vadd.f32 %v52_v21, %v47_v19  ;;  %v55_v23 = vadd.f32 %v52_v21, %v48_v20 }
 0x1d1   :  { %56 = vst [vmem:[#allocation5] sm:$0xff] %v54_v22  ;;  %57 = vst [vmem:[#allocation5 + $0x8] sm:$0xff] %v55_v23 }
 0x1d2   :  { %115 = shalt.err (!%p112_p12)
}
 0x1d3   :  { %s116_s26 = scalar_lea.hbm %s178_s2, 256 }
 0x1d4   :  { %p117_p13 = scmp.ne.s32.totalorder %s178_s2, %s116_s26  ;;  %p120_p0 = scmp.lt.u32.totalorder %s116_s26, %s178_s2 }
 0x1d6   :  { %p122_p1 = pnand %p120_p0, %p117_p13 }
 0x1d8   :  { %125 = shalt.err (!%p122_p1)
}
 0x1d9   :  { %67 = dma.vmem_to_hbm [thread:$0]  %s65_s23, 256, %s178_s2, [#allocation4]  }
 0x1da   :  { %128 = dma.done.wait [#allocation4], 256  }
 0x1db   :  { %129 = vsyncadd [#allocation4], 4294967040 }
 0x1dc   :  { %71 = vsyncpa [#allocation3], 1 }
 0x1dd   :  { %72 = vsyncpa [#allocation4], 1 }

</bundles_post_ra>
